<compile_context>
chip_gen: v6e
topology: v6e:2x2x1
jax: 0.10.0
libtpu: 0.0.40
codegen_flags: <defaults>
</compile_context>

<pallas_src>
import jax
import jax.numpy as jnp
from jax.experimental import pallas as pl
from jax.experimental.pallas import tpu as pltpu


# --------------------------------------------------------------------------
# Kernel body
# --------------------------------------------------------------------------
def _linear_head_kernel(x_ref, w_ref, b_ref, o_ref):
    """One batch tile: y[tb, 0] = sum_d x[tb, d] * w[0, d] + bias."""
    x = x_ref[...]                                   # [TB, D]  VMEM
    w = w_ref[...]                                   # [1, D]   VMEM, lane-dense
    # GEMV with N=1: VPU multiply (native dtype) + lane reduce, f32 accumulate.
    acc = jnp.sum(x * w, axis=-1, keepdims=True, dtype=jnp.float32)  # [TB, 1]
    o_ref[...] = (acc + b_ref[0]).astype(o_ref.dtype)


# --------------------------------------------------------------------------
# Tile-size planning (generation-aware, VMEM-accounted)
# --------------------------------------------------------------------------
def _cdiv(a, b):
    return (a + b - 1) // b


def _rup(x, m):
    return ((x + m - 1) // m) * m


def _vmem_plan():
    """(total VMEM budget for this kernel's buffers, min #tiles, want even #tiles)."""
    kind = ""
    try:
        kind = jax.devices()[0].device_kind.lower()
    except Exception:
        pass
    if "v7" in kind:
        # 64 MiB physical VMEM, 3.2 TB/s HBM, 2 TCs: big tiles, >=4 even tiles.
        return 44 << 20, 4, True
    if "v6" in kind:
        # 32 MiB default scoped limit: ~12 MiB per x buffer is free headroom.
        return 28 << 20, 2, False
    # v5e (16 MiB default scoped limit) and anything unknown: conservative.
    return 14 << 20, 2, False


def _pick_batch_tile(batch, dim, x_itemsize, out_itemsize, w_itemsize):
    budget, min_tiles, want_even = _vmem_plan()

    # Resident (1, D) weight: padded to 8 sublanes, double-buffered by the pipeline.
    weight_bytes = 2 * 8 * dim * w_itemsize
    # Per batch row, double-buffered: x row + lane-padded (tb,1)->(tb,128) out row.
    per_row = 2 * (dim * x_itemsize + 128 * out_itemsize)

    avail = max(budget - weight_bytes, 32 * per_row)
    tb = max(32, (avail // per_row) // 32 * 32)       # 32-row multiple (bf16/int8 safe)

    total_x_bytes = batch * dim * x_itemsize
    if total_x_bytes > (2 << 20):
        # Big enough that pipelining / dual-core splitting matters: force >= min_tiles.
        tb = min(tb, _rup(_cdiv(batch, min_tiles), 32))

    if tb >= batch:
        # Tiny problem: one full-extent block (always layout-legal).
        return batch

    if want_even:
        # v7x: keep the tile count even so the two TensorCores stay balanced.
        n = _cdiv(batch, tb)
        if n > 1 and n % 2 == 1:
            tb_alt = _rup(_cdiv(batch, n + 1), 32)
            if 0 < tb_alt < batch and _cdiv(batch, tb_alt) % 2 == 0:
                tb = tb_alt
    return tb


# --------------------------------------------------------------------------
# Wrapper
# --------------------------------------------------------------------------
def linear_model_forward(x, weight, bias, *, block_b=None):
    """y = x @ weight.T + bias, matching nn.Linear(dim, 1).

    x:      [B, D]
    weight: [1, D]  (native PyTorch layout, kept lane-dense -- no transpose)
    bias:   [1]
    returns [B, 1] in x.dtype
    """
    B, D = x.shape
    assert weight.shape == (1, D)
    assert bias.shape == (1,)

    out_itemsize = x.dtype.itemsize
    if block_b is not None:
        tb = block_b
    else:
        tb = _pick_batch_tile(B, D, x.dtype.itemsize, out_itemsize,
                              weight.dtype.itemsize)
    grid = (pl.cdiv(B, tb),)

    # Real footprint of this kernel's VMEM buffers (+ headroom), used as an
    # explicit scoped-VMEM limit so every generation compiles predictably.
    footprint = (2 * tb * (D * x.dtype.itemsize + 128 * out_itemsize)
                 + 2 * 8 * D * weight.dtype.itemsize)
    vmem_limit = int(min(56 << 20, max(footprint + (4 << 20), 16 << 20)))

    cost = pl.CostEstimate(
        flops=2 * B * D,
        transcendentals=0,
        bytes_accessed=(x.size * x.dtype.itemsize
                        + weight.size * weight.dtype.itemsize
                        + bias.size * bias.dtype.itemsize
                        + B * out_itemsize),
    )

    return pl.pallas_call(
        _linear_head_kernel,
        out_shape=jax.ShapeDtypeStruct((B, 1), x.dtype),
        grid=grid,
        in_specs=[
            pl.BlockSpec((tb, D), lambda i: (i, 0)),             # x: pipelined batch tiles
            pl.BlockSpec((1, D), lambda i: (0, 0)),              # weight: resident, lane-dense
            pl.BlockSpec(memory_space=pltpu.MemorySpace.SMEM),   # bias: scalar in SMEM
        ],
        out_specs=pl.BlockSpec((tb, 1), lambda i: (i, 0)),
        compiler_params=pltpu.CompilerParams(
            dimension_semantics=("parallel",),   # megacore-shard batch tiles on v7x
            vmem_limit_bytes=vmem_limit,
        ),
        cost_estimate=cost,
    )(x, weight, bias)


# --------------------------------------------------------------------------
# Smoke test
# --------------------------------------------------------------------------
if __name__ == "__main__":
    # dim=768 matches the LinearModel default; small batch for the smoke test.
    B, D = 16, 768
    key = jax.random.PRNGKey(0)
    kx, kw, kb = jax.random.split(key, 3)

    x = jax.random.normal(kx, (B, D), dtype=jnp.float32)
    # Deterministic "nn.Linear(dim, 1)"-shaped params (synthetic init).
    bound = 1.0 / (D ** 0.5)
    weight = jax.random.uniform(kw, (1, D), jnp.float32, -bound, bound)
    bias = jax.random.uniform(kb, (1,), jnp.float32, -bound, bound)

    y = linear_model_forward(x, weight, bias)
    jax.block_until_ready(y)

    y_ref = x @ weight.T + bias
    assert y.shape == (B, 1)
    assert jnp.allclose(y, y_ref, atol=1e-5, rtol=1e-5)

    # Also exercise the multi-tile pipelined path, including a partial
    # final tile (B not a multiple of the block size).
    B2 = 40
    x2 = jax.random.normal(kx, (B2, D), dtype=jnp.float32)
    y2 = linear_model_forward(x2, weight, bias, block_b=16)
    jax.block_until_ready(y2)
    y2_ref = x2 @ weight.T + bias
    assert y2.shape == (B2, 1)
    assert jnp.allclose(y2, y2_ref, atol=1e-5, rtol=1e-5)

    print("KERNEL_OK")
</pallas_src>

<mosaic_0001>
module attributes {stable_mosaic.version = 11 : i64} {
  func.func @_linear_head_kernel(%arg0: i32, %arg1: memref<16x768xf32, #tpu.memory_space<vmem>>, %arg2: memref<1x768xf32, #tpu.memory_space<vmem>>, %arg3: memref<1xf32, #tpu.memory_space<smem>>, %arg4: memref<16x1xf32, #tpu.memory_space<vmem>>) attributes {dimension_semantics = [#tpu.dimension_semantics<parallel>], iteration_bounds = array<i64: 1>, scalar_prefetch = 0 : i64, scratch_operands = 0 : i64, tpu.core_type = #tpu.core_type<tc>, window_params = [{transform_indices = @transform_0, window_bounds = array<i64: 16, 768>}, {pipeline_mode = #tpu.pipeline_mode<synchronous>, transform_indices = @transform_1, window_bounds = array<i64: 1, 768>}, {transform_indices = @transform_2, window_bounds = array<i64: 1>}, {transform_indices = @transform_3, window_bounds = array<i64: 16, 1>}]} {
    %c0 = arith.constant 0 : index
    %c0_0 = arith.constant 0 : index
    %0 = vector.load %arg1[%c0, %c0_0] : memref<16x768xf32, #tpu.memory_space<vmem>>, vector<16x768xf32>
    %c0_1 = arith.constant 0 : index
    %c0_2 = arith.constant 0 : index
    %1 = vector.load %arg2[%c0_1, %c0_2] : memref<1x768xf32, #tpu.memory_space<vmem>>, vector<1x768xf32>
    %2 = vector.broadcast %1 : vector<1x768xf32> to vector<16x768xf32>
    %3 = arith.mulf %0, %2 : vector<16x768xf32>
    %cst = arith.constant dense<0.000000e+00> : vector<16xf32>
    %4 = vector.multi_reduction <add>, %3, %cst [1] : vector<16x768xf32> to vector<16xf32>
    %5 = vector.shape_cast %4 : vector<16xf32> to vector<16x1xf32>
    %c0_3 = arith.constant 0 : index
    %6 = memref.load %arg3[%c0_3] : memref<1xf32, #tpu.memory_space<smem>>
    %7 = vector.broadcast %6 : f32 to vector<16x1xf32>
    %8 = arith.addf %5, %7 : vector<16x1xf32>
    %c0_4 = arith.constant 0 : index
    %c0_5 = arith.constant 0 : index
    %9 = vector.load %arg4[%c0_4, %c0_5] : memref<16x1xf32, #tpu.memory_space<vmem>>, vector<16x1xf32>
    tpu.vector_store %arg4[%c0_4, %c0_5], %8 {strides = array<i32>} : memref<16x1xf32, #tpu.memory_space<vmem>>, vector<16x1xf32>,
    return
  }
  func.func @transform_0(%arg0: i32) -> (i32, i32) {
    %c0_i32 = arith.constant 0 : i32
    %c0_i32_0 = arith.constant 0 : i32
    return %arg0, %c0_i32 : i32, i32
  }
  func.func @transform_1(%arg0: i32) -> (i32, i32) {
    %c0_i32 = arith.constant 0 : i32
    %c0_i32_0 = arith.constant 0 : i32
    %c0_i32_1 = arith.constant 0 : i32
    return %c0_i32, %c0_i32_0 : i32, i32
  }
  func.func @transform_2(%arg0: i32) -> i32 {
    %c0_i32 = arith.constant 0 : i32
    %c0_i32_0 = arith.constant 0 : i32
    return %c0_i32 : i32
  }
  func.func @transform_3(%arg0: i32) -> (i32, i32) {
    %c0_i32 = arith.constant 0 : i32
    %c0_i32_0 = arith.constant 0 : i32
    return %arg0, %c0_i32 : i32, i32
  }
}

</mosaic_0001>

<bundles_post_ra>
// kernel: tpu_custom_call.1
= control target key start
LH: loop header
LB: loop body
LE: loop exit
PB: predicated region body
PF: predicated region fallthrough
CT: control target
= control target key end

     0   :  { %9 = vsyncpa [#allocation4], 0  ;;  %s211_s0 = inlined_call_operand.hbm [shape: f32[16,768], index: 0, kind: input, shape index: {}]   ;;  %s212_s1 = inlined_call_operand.hbm [shape: f32[1,768], index: 1, kind: input, shape index: {}]   ;;  %s213_s2 = inlined_call_operand.<no memory space> [shape: f32[1], index: 2, kind: input, shape index: {}]   ;;  %s214_s3 = inlined_call_operand.vmem [shape: f32[16,1], index: 3, kind: output, shape index: {}]  }
   0x1   :  { %10 = vsyncpa [#allocation6], 0  ;;  %s172_s12 = smov [#allocation3]  }
   0x2   :  { %s16_s13 = sshll.u32 %s172_s12, 4  ;;  %s17_s13 = int_to_ptr.vmem [resolvable:$true] %s16_s13 }
   0x3   :  { %s136_s14 = scalar_lea.vmem %s17_s13, 1536  ;;  %p141_p1 = scmp.lt.s32.totalorder %s17_s13, %s17_s13 }
   0x4   :  { %p137_p0 = scmp.ne.s32.totalorder %s17_s13, %s136_s14  ;;  %p142_p2 = scmp.lt.s32.totalorder %s136_s14, %s136_s14 }
   0x6   :  { %p143_p3 = por %p142_p2, %p141_p1 }
   0x8   :  { %p144_p4 = pnand %p143_p3, %p137_p0 }
   0xa   :  { %147 = shalt.err (!%p144_p4)
}
   0xb   :  { %s173_s15 = smov 768   ;;  %s174_s16 = smov 48  }
   0xc   :  { %22 = dma.hbm_to_vmem [thread:$0]  %s211_s0, 1536, %s17_s13, [#allocation4], %s173_s15, %s173_s15, %s174_s16  }
   0xd   :  { %s175_s19 = smov [#allocation5]  }
   0xe   :  { %s29_s20 = sshll.u32 %s175_s19, 4  ;;  %s30_s20 = int_to_ptr.vmem [resolvable:$true] %s29_s20 }
   0xf   :  { %s156_s21 = scalar_lea.vmem %s30_s20, 96  ;;  %p161_p6 = scmp.lt.s32.totalorder %s30_s20, %s30_s20 }
  0x10   :  { %p157_p5 = scmp.ne.s32.totalorder %s30_s20, %s156_s21  ;;  %p162_p7 = scmp.lt.s32.totalorder %s156_s21, %s156_s21 }
  0x12   :  { %p163_p8 = por %p162_p7, %p161_p6 }
  0x14   :  { %p164_p9 = pnand %p163_p8, %p157_p5 }
  0x16   :  { %167 = shalt.err (!%p164_p9)
}
  0x17   :  { %32 = dma.hbm_to_vmem [thread:$0]  %s212_s1, 96, %s30_s20, [#allocation6]  }
  0x18   :  { %168 = dma.done.wait [#allocation4], 1536  }
  0x19   :  { %169 = vsyncadd [#allocation4], 4294965760 }
  0x1a   :  { %170 = dma.done.wait [#allocation6], 96  }
  0x1b   :  { %171 = vsyncadd [#allocation6], 4294967200  ;;  %v55_v0 = vlaneseq  ;;  %v41_v6 = vld [vmem:[#allocation3] sm:$0xff]  ;;  %v42_v8 = vld [vmem:[#allocation3 + $0x8] sm:$0xff]  ;;  %v112_v49 = vstv %s213_s2  ;;  %vm115_vm0 = vcmask 7168  }
  0x1c   :  { %v43_v9 = vld [vmem:[#allocation3 + $0x10] sm:$0xff]  ;;  %v53_v10 = vld [vmem:[#allocation5] sm:$0x3f]  ;;  %v48_v17 = vld [vmem:[#allocation3 + $0x38] sm:$0xff] }
  0x1d   :  { %v56_v1 = vshrl.u32 %v55_v0, 7  ;;  %v47_v16 = vld [vmem:[#allocation3 + $0x30] sm:$0xff]  ;;  %v44_v18 = vld [vmem:[#allocation3 + $0x18] sm:$0xff]  ;;  %v49_v19 = vld [vmem:[#allocation3 + $0x40] sm:$0xff] }
  0x1e   :  { %v50_v24 = vld [vmem:[#allocation3 + $0x48] sm:$0xff]  ;;  %v45_v25 = vld [vmem:[#allocation3 + $0x20] sm:$0xff]  ;;  %v51_v31 = vld [vmem:[#allocation3 + $0x50] sm:$0xff] }
  0x1f   :  { %v57_v2 = vsub.s32 0, %v56_v1  ;;  %v61_v3 = vsub.s32 1, %v56_v1  ;;  %v65_v4 = vsub.s32 2, %v56_v1  ;;  %v69_v5 = vsub.s32 3, %v56_v1  ;;  %v46_v33 = vld [vmem:[#allocation3 + $0x28] sm:$0xff]  ;;  %v52_v38 = vld [vmem:[#allocation3 + $0x58] sm:$0xff] }
  0x20   :  { %v73_v7 = vsub.s32 4, %v56_v1  ;;  %v77_v11 = vsub.s32 5, %v56_v1 }
  0x21   :  { %v58_v12 = vrot.slane %v53_v10, %v57_v2  ;;  %v62_v13 = vrot.slane %v53_v10, %v61_v3  ;;  %v66_v14 = vrot.slane %v53_v10, %v65_v4  ;;  %v70_v15 = vrot.slane %v53_v10, %v69_v5 }
  0x22   :  { %v74_v20 = vrot.slane %v53_v10, %v73_v7  ;;  %v78_v28 = vrot.slane %v53_v10, %v77_v11 }
  0x23   :  { %v85_v21 = vmul.f32 %v58_v12, %v41_v6  ;;  %v86_v22 = vmul.f32 %v62_v13, %v42_v8  ;;  %v87_v23 = vmul.f32 %v66_v14, %v43_v9  ;;  %v91_v26 = vmul.f32 %v58_v12, %v47_v16 }
  0x24   :  { %v92_v27 = vmul.f32 %v62_v13, %v48_v17  ;;  %v88_v29 = vmul.f32 %v70_v15, %v44_v18  ;;  %v93_v32 = vmul.f32 %v66_v14, %v49_v19  ;;  %v94_v34 = vmul.f32 %v70_v15, %v50_v24 }
  0x25   :  { %v97_v30 = vadd.f32 %v86_v22, %v85_v21  ;;  %v89_v36 = vmul.f32 %v74_v20, %v45_v25  ;;  %v95_v39 = vmul.f32 %v74_v20, %v51_v31  ;;  %v90_v41 = vmul.f32 %v78_v28, %v46_v33 }
  0x26   :  { %v104_v35 = vadd.f32 %v92_v27, %v91_v26  ;;  %v96_v45 = vmul.f32 %v78_v28, %v52_v38 }
  0x27   :  { %v98_v37 = vadd.f32 %v97_v30, %v87_v23 }
  0x28   :  { %v105_v40 = vadd.f32 %v104_v35, %v93_v32 }
  0x29   :  { %v99_v42 = vadd.f32 %v98_v37, %v88_v29 }
  0x2a   :  { %v106_v43 = vadd.f32 %v105_v40, %v94_v34 }
  0x2b   :  { %v100_v44 = vadd.f32 %v99_v42, %v89_v36 }
  0x2c   :  { %v107_v46 = vadd.f32 %v106_v43, %v95_v39 }
  0x2d   :  { %v101_v47 = vadd.f32 %v100_v44, %v90_v41 }
  0x2e   :  { %v108_v48 = vadd.f32 %v107_v46, %v96_v45 }
  0x2f   :  { %102 = vadd.xlane.f32.xlu0 %v101_v47 }
  0x33   :  { %109 = vadd.xlane.f32.xlu0 %v108_v48 }
  0xb8   :  { %v103_v50 = vpop.xlane.xlu0 %102 }
  0xb9   :  { %v113_v51 = vadd.f32 %v112_v49, %v103_v50 }
  0xbb   :  { %116 = vst.msk [vmem:[%s214_s3] sm:$0xff] %vm115_vm0, %v113_v51 }
  0xbc   :  { %v110_v52 = vpop.xlane.xlu0 %109 }
  0xbd   :  { %v114_v53 = vadd.f32 %v112_v49, %v110_v52 }
  0xbf   :  { %117 = vst.msk [vmem:[%s214_s3 + $0x8] sm:$0xff] %vm115_vm0, %v114_v53 }
  0xc0   :  { %122 = vsyncpa [#allocation4], 1 }
  0xc1   :  { %123 = vsyncpa [#allocation6], 1 }

</bundles_post_ra>
